<compile_context>
chip_gen: v5e
topology: v5e:2x2
jax: 0.10.0
libtpu: 0.0.40
codegen_flags: <defaults>
</compile_context>

<pallas_src>
import functools

import jax
import jax.numpy as jnp
from jax.experimental import pallas as pl
from jax.experimental.pallas import tpu as pltpu


def _self_attention_kernel(x_ref, w_ref, b_ref, o_ref, *, fold_batch,
                           approx_recip):
    # x_ref: (TB, S, D)   w_ref: (D, H)   b_ref: (1, H)   o_ref: (TB, S, D)
    tb, s, d = x_ref.shape
    h = w_ref.shape[1]

    x = x_ref[...]                       # native dtype -> MXU fast path
    w = w_ref[...]
    b = b_ref[...].astype(jnp.float32)   # (1, H): softmax math stays f32

    # ---- attn_scores = x @ W + b ----
    if fold_batch:
        # Fold batch into the MXU M dimension (layout-free: S sublane-aligned).
        scores = jnp.dot(x.reshape(tb * s, d), w,
                         preferred_element_type=jnp.float32) + b   # (TB*S, H)
        scores = scores.reshape(tb, s, h)
    else:
        # S not sublane-aligned: batched matmul avoids a VMEM relayout copy.
        wb = jnp.broadcast_to(w[None], (tb, d, h))
        scores = jnp.einsum("bsd,bdh->bsh", x, wb,
                            preferred_element_type=jnp.float32) + b

    # ---- softmax over H (f32) ----
    m = jnp.max(scores, axis=-1, keepdims=True)
    e = jnp.exp(scores - m)
    denom = jnp.sum(e, axis=-1, keepdims=True)
    if approx_recip:
        attn = e * pl.reciprocal(denom, approx=True)   # EUP slot, ~free
    else:
        attn = e / denom

    # ---- weighted_sum = attn @ x  (per batch row; requires H == S) ----
    ws = jnp.einsum("bsh,bhd->bsd", attn.astype(x.dtype), x,
                    preferred_element_type=jnp.float32)            # (TB, S, D)

    # ---- activation = ReLU ----
    o_ref[...] = jnp.maximum(ws, 0.0).astype(o_ref.dtype)


def _tpu_config():
    """Return (scoped VMEM budget in bytes, multi-TensorCore flag)."""
    vmem_cap = 64 * 2 ** 20            # conservative fallback (v7x per-TC VMEM)
    try:
        info = pltpu.get_tpu_info()
        vmem_cap = int(getattr(info, "vmem_capacity_bytes", vmem_cap))
    except Exception:
        pass
    multi_tc = False
    try:
        kind = jax.devices()[0].device_kind.lower()
        multi_tc = any(tag in kind for tag in ("v7", "7x", "v4", "v3"))
    except Exception:
        pass
    # 80 MiB on v5e/v6e (128 MiB physical), 40 MiB on v7x (64 MiB physical).
    budget = int(min(vmem_cap * 5 // 8, 96 * 2 ** 20))
    return budget, multi_tc


def _pick_batch_tile(B, S, D, H, itemsize, step_cap, multi_tc):
    """Batch rows per grid step: fill the folded MXU M dimension (~512 rows),
    reserve >= 2 grid steps only when 2 TensorCores can shard the parallel
    axis, and bound the per-step VMEM footprint against `step_cap`."""
    tb = max(1, min(B, 512 // max(S, 1)))
    if multi_tc and B >= 2:
        tb = min(tb, max(1, pl.cdiv(B, 2)))      # >= 2 grid steps for 2 TCs

    def step_bytes(t):
        xo = t * S * D * itemsize                # one x block == one out block
        f32_tmp = t * S * (3 * H + D) * 4        # scores + e/attn + f32 accum
        return 2 * 2 * xo + f32_tmp              # 2x: double-buffered in & out

    while tb > 1 and step_bytes(tb) > step_cap:
        tb = max(1, tb // 2)
    return tb


@functools.partial(jax.jit, static_argnames=("approx_reciprocal",))
def self_attention(x, attn_weights, attn_bias, approx_reciprocal=True):
    """x: (B, S, D), attn_weights: (D, H), attn_bias: (H,). Requires H == S."""
    B, S, D = x.shape
    Dw, H = attn_weights.shape
    assert Dw == D
    assert H == S, "reference module semantics require hidden_dim == seq_len"

    # bf16 x with f32 W would silently promote the dot: match W to x.dtype.
    w = attn_weights.astype(x.dtype)
    bias2d = attn_bias.astype(jnp.float32).reshape(1, H)

    itemsize = x.dtype.itemsize
    sublane = max(8, 32 // itemsize)             # 8 (f32), 16 (bf16)
    fold_batch = (S % sublane) == 0

    budget, multi_tc = _tpu_config()
    resident = D * H * itemsize + H * 4          # single-buffered W + bias
    step_cap = max(2 * 2 ** 20, budget - resident - 4 * 2 ** 20)
    tb = _pick_batch_tile(B, S, D, H, itemsize, step_cap, multi_tc)
    grid = (pl.cdiv(B, tb),)                     # partial last tile is masked

    # Advisory cost estimate for XLA's scheduler.
    flops = 4 * B * S * H * D
    bytes_accessed = (x.size * itemsize + w.size * w.dtype.itemsize
                      + bias2d.size * 4 + B * S * D * itemsize)
    cost = pl.CostEstimate(flops=flops, transcendentals=B * S * H,
                           bytes_accessed=bytes_accessed)

    kernel = functools.partial(_self_attention_kernel,
                               fold_batch=fold_batch,
                               approx_recip=approx_reciprocal)

    return pl.pallas_call(
        kernel,
        out_shape=jax.ShapeDtypeStruct((B, S, D), x.dtype),
        grid_spec=pltpu.PrefetchScalarGridSpec(
            num_scalar_prefetch=0,
            grid=grid,
            in_specs=[
                pl.BlockSpec((tb, S, D), lambda i: (i, 0, 0)),       # x tile
                pl.BlockSpec((D, H), lambda i: (0, 0),               # W resident
                             pipeline_mode=pl.Buffered(1)),
                pl.BlockSpec((1, H), lambda i: (0, 0),               # bias
                             pipeline_mode=pl.Buffered(1)),
            ],
            out_specs=pl.BlockSpec((tb, S, D), lambda i: (i, 0, 0)),
        ),
        compiler_params=pltpu.CompilerParams(
            dimension_semantics=("parallel",),
            vmem_limit_bytes=budget),
        cost_estimate=cost,
    )(x, w, bias2d)


def _reference(x, w, b):
    scores = jnp.matmul(x, w) + b
    attn = jax.nn.softmax(scores, axis=-1)
    ws = jnp.matmul(attn, x)
    return jnp.maximum(ws, 0.0)


if __name__ == "__main__":
    # Small shapes consistent with the module: batch=2, seq=8, input_dim=16,
    # hidden_dim=8 (hidden_dim must equal seq_len for the second matmul).
    B, S, D, H = 2, 8, 16, 8
    key = jax.random.PRNGKey(0)
    kx, kw = jax.random.split(key)

    x = jax.random.normal(kx, (B, S, D), dtype=jnp.float32)
    # torch.rand -> uniform [0, 1); torch.zeros -> zeros.
    attn_weights = jax.random.uniform(kw, (D, H), dtype=jnp.float32)
    attn_bias = jnp.zeros((H,), dtype=jnp.float32)

    out = jax.block_until_ready(self_attention(x, attn_weights, attn_bias))

    ref = _reference(x, attn_weights, attn_bias)
    assert out.shape == (B, S, D)
    # Tolerance covers the approximate (EUP) reciprocal in the softmax
    # normalization; pass approx_reciprocal=False for an exact divide.
    assert jnp.allclose(out, ref, atol=2e-3, rtol=2e-3), "mismatch vs reference"

    print("KERNEL_OK")
</pallas_src>

<mosaic_0001>
module attributes {stable_mosaic.version = 11 : i64} {
  func.func @_self_attention_kernel(%arg0: i32, %arg1: memref<2x8x16xf32, #tpu.memory_space<vmem>>, %arg2: memref<16x8xf32, #tpu.memory_space<vmem>>, %arg3: memref<1x8xf32, #tpu.memory_space<vmem>>, %arg4: memref<2x8x16xf32, #tpu.memory_space<vmem>>) attributes {dimension_semantics = [#tpu.dimension_semantics<parallel>], iteration_bounds = array<i64: 1>, scalar_prefetch = 0 : i64, scratch_operands = 0 : i64, tpu.core_type = #tpu.core_type<tc>, window_params = [{transform_indices = @transform_0, window_bounds = array<i64: 2, 8, 16>}, {pipeline_mode = #tpu.pipeline_mode<synchronous>, transform_indices = @transform_1, window_bounds = array<i64: 16, 8>}, {pipeline_mode = #tpu.pipeline_mode<synchronous>, transform_indices = @transform_2, window_bounds = array<i64: 1, 8>}, {transform_indices = @transform_3, window_bounds = array<i64: 2, 8, 16>}]} {
    %c0 = arith.constant 0 : index
    %c0_0 = arith.constant 0 : index
    %c0_1 = arith.constant 0 : index
    %0 = vector.load %arg1[%c0, %c0_0, %c0_1] : memref<2x8x16xf32, #tpu.memory_space<vmem>>, vector<2x8x16xf32>
    %c0_2 = arith.constant 0 : index
    %c0_3 = arith.constant 0 : index
    %1 = vector.load %arg2[%c0_2, %c0_3] : memref<16x8xf32, #tpu.memory_space<vmem>>, vector<16x8xf32>
    %c0_4 = arith.constant 0 : index
    %c0_5 = arith.constant 0 : index
    %2 = vector.load %arg3[%c0_4, %c0_5] : memref<1x8xf32, #tpu.memory_space<vmem>>, vector<1x8xf32>
    %3 = vector.shape_cast %0 : vector<2x8x16xf32> to vector<16x16xf32>
    %cst = arith.constant dense<0.000000e+00> : vector<16x8xf32>
    %4 = tpu.matmul %3, %1, %cst {dimension_numbers = #tpu.dot_dimension_numbers<[1], [0], [0], [1], [0, 0, 1, 1], [], []>} : vector<16x16xf32>, vector<16x8xf32>, vector<16x8xf32> -> vector<16x8xf32>
    %5 = vector.broadcast %2 : vector<1x8xf32> to vector<16x8xf32>
    %6 = arith.addf %4, %5 : vector<16x8xf32>
    %7 = vector.shape_cast %6 : vector<16x8xf32> to vector<2x8x8xf32>
    %cst_6 = arith.constant dense<0xFF800000> : vector<2x8xf32>
    %8 = vector.multi_reduction <maximumf>, %7, %cst_6 [2] : vector<2x8x8xf32> to vector<2x8xf32>
    %9 = vector.shape_cast %8 : vector<2x8xf32> to vector<2x8x1xf32>
    %10 = vector.broadcast %9 : vector<2x8x1xf32> to vector<2x8x8xf32>
    %11 = arith.subf %7, %10 : vector<2x8x8xf32>
    %12 = math.exp %11 : vector<2x8x8xf32>
    %cst_7 = arith.constant dense<0.000000e+00> : vector<2x8xf32>
    %13 = vector.multi_reduction <add>, %12, %cst_7 [2] : vector<2x8x8xf32> to vector<2x8xf32>
    %14 = vector.shape_cast %13 : vector<2x8xf32> to vector<2x8x1xf32>
    %15 = tpu.reciprocal %14 {approx = true} : vector<2x8x1xf32> -> vector<2x8x1xf32>
    %16 = vector.broadcast %15 : vector<2x8x1xf32> to vector<2x8x8xf32>
    %17 = arith.mulf %12, %16 : vector<2x8x8xf32>
    "tpu.trace_start"() <{level = 10 : i32, message = "bsh,bhd->bsd"}> : () -> ()
    %cst_8 = arith.constant dense<0.000000e+00> : vector<2x8x16xf32>
    %18 = tpu.matmul %17, %0, %cst_8 {dimension_numbers = #tpu.dot_dimension_numbers<[2], [1], [1], [2], [0, 0, 0, 1, 1, 2], [0], [0]>} : vector<2x8x8xf32>, vector<2x8x16xf32>, vector<2x8x16xf32> -> vector<2x8x16xf32>
    "tpu.trace_stop"() : () -> ()
    %cst_9 = arith.constant 0.000000e+00 : f32
    %19 = vector.broadcast %cst_9 : f32 to vector<2x8x16xf32>
    %20 = arith.maximumf %18, %19 : vector<2x8x16xf32>
    %c0_10 = arith.constant 0 : index
    %c0_11 = arith.constant 0 : index
    %c0_12 = arith.constant 0 : index
    %21 = vector.load %arg4[%c0_10, %c0_11, %c0_12] : memref<2x8x16xf32, #tpu.memory_space<vmem>>, vector<2x8x16xf32>
    tpu.vector_store %arg4[%c0_10, %c0_11, %c0_12], %20 {strides = array<i32>} : memref<2x8x16xf32, #tpu.memory_space<vmem>>, vector<2x8x16xf32>,
    return
  }
  func.func @transform_0(%arg0: i32) -> (i32, i32, i32) {
    %c0_i32 = arith.constant 0 : i32
    %c0_i32_0 = arith.constant 0 : i32
    %c0_i32_1 = arith.constant 0 : i32
    return %arg0, %c0_i32, %c0_i32_0 : i32, i32, i32
  }
  func.func @transform_1(%arg0: i32) -> (i32, i32) {
    %c0_i32 = arith.constant 0 : i32
    %c0_i32_0 = arith.constant 0 : i32
    %c0_i32_1 = arith.constant 0 : i32
    return %c0_i32, %c0_i32_0 : i32, i32
  }
  func.func @transform_2(%arg0: i32) -> (i32, i32) {
    %c0_i32 = arith.constant 0 : i32
    %c0_i32_0 = arith.constant 0 : i32
    %c0_i32_1 = arith.constant 0 : i32
    return %c0_i32, %c0_i32_0 : i32, i32
  }
  func.func @transform_3(%arg0: i32) -> (i32, i32, i32) {
    %c0_i32 = arith.constant 0 : i32
    %c0_i32_0 = arith.constant 0 : i32
    %c0_i32_1 = arith.constant 0 : i32
    return %arg0, %c0_i32, %c0_i32_0 : i32, i32, i32
  }
}

</mosaic_0001>

<bundles_post_ra>
// kernel: self_attention.1
= control target key start
LH: loop header
LB: loop body
LE: loop exit
PB: predicated region body
PF: predicated region fallthrough
CT: control target
= control target key end

     0   :  { %vm23_vm0 = vcmask 130048   ;;  %s239_s0 = inlined_call_operand.vmem [shape: f32[2,8,16], index: 0, kind: input, shape index: {}]   ;;  %s240_s1 = inlined_call_operand.vmem [shape: f32[16,8], index: 1, kind: input, shape index: {}]   ;;  %s241_s2 = inlined_call_operand.vmem [shape: f32[1,8], index: 2, kind: input, shape index: {}]   ;;  %s242_s3 = inlined_call_operand.hbm [shape: f32[2,8,16], index: 3, kind: output, shape index: {}]  }
   0x1   :  { %v18_v0 = vld [vmem:[%s240_s1 + $0x8] sm:$0xff]  ;;  %v17_v1 = vld [vmem:[%s240_s1] sm:$0xff] }
   0x2   :  { %148 = vmatpush.msra.mxu3 %v18_v0  ;;  %v16_v2 = vld [vmem:[%s239_s0 + $0x8] sm:$0xff]  ;;  %44 = vmatpush.msra.mxu0 %v18_v0  ;;  %v15_v3 = vld [vmem:[%s239_s0] sm:$0xff] }
   0x3   :  { %117 = vmatpush.msra.mxu2 %v16_v2  ;;  %94 = vmatpush.msra.mxu1 %v15_v3 }
   0x4   :  { %8 = vsyncpa [#allocation3], 0  ;;  %149 = vmatpush.msra.mxu3 %v17_v1  ;;  %45 = vmatpush.msra.mxu0 %v17_v1  ;;  %v153_v4 = vld [vmem:[%s241_s2] ss:$0 sm:$0xff]  ;;  %vm53_vm1 = vcmask 64512   ;;  %s188_s0 = smov [#allocation2]  }
   0x5   :  { %145 = vmatmul.msk.f32.vlgmr.msra.gmra.mxu3 %vm23_vm0, %v16_v2  ;;  %144 = vmatmul.msk.f32.vlgmr.msra.gmra.mxu0 %vm23_vm0, %v15_v3  ;;  %s130_s2 = sshll.u32 %s188_s0, 4  ;;  %s132_s23 = sshll.u32 %s242_s3, 4  ;;  %s131_s2 = int_to_ptr.vmem [resolvable:$true] %s130_s2  ;;  %s133_s23 = int_to_ptr.hbm [resolvable:$true] %s132_s23 }
   0x6   :  { %s189_s24 = smov 128   ;;  %s190_s25 = smov 8  }
  0x82   :  { %v47_v7 = vpop.f32.mrf.mxu0 }
  0x83   :  { %v48_v9 = vadd.f32 %v153_v4, %v47_v7 }
  0x85   :  { %v54_v10 = vsel %vm53_vm1, %v48_v9, -inf }
  0x88   :  { %v50_v5 = vpop.f32.mrf.mxu3 }
  0x89   :  { %v51_v6 = vadd.f32 %v153_v4, %v50_v5 }
  0x8b   :  { %v57_v8 = vsel %vm53_vm1, %v51_v6, -inf }
  0x8c   :  { %58 = vmax.xlane.f32.xlu0 %v57_v8 }
  0x94   :  { %55 = vmax.xlane.f32.xlu0 %v54_v10 }
  0xff   :  { %v59_v11 = vpop.xlane.xlu0 %58 }
 0x100   :  { %v61_v12 = vsub.f32 %v51_v6, %v59_v11 }
 0x102   :  { %v64_v13 = vmul.f32 1.442695, %v61_v12 }
 0x104   :  { %154 = vpow2.f32 %v64_v13 }
 0x107   :  { %v56_v14 = vpop.xlane.xlu0 %55 }
 0x108   :  { %v60_v15 = vsub.f32 %v48_v9, %v56_v14 }
 0x10a   :  { %v155_v16 = vpop.eup %154  ;;  %v62_v17 = vmul.f32 1.442695, %v60_v15 }
 0x10b   :  { %v69_v18 = vsel %vm53_vm1, %v155_v16, 0.0 }
 0x10c   :  { %156 = vpow2.f32 %v62_v17  ;;  %70 = vadd.xlane.f32.xlu1 %v69_v18 }
 0x112   :  { %v157_v19 = vpop.eup %156 }
 0x113   :  { %v66_v20 = vsel %vm53_vm1, %v157_v19, 0.0 }
 0x114   :  { %67 = vadd.xlane.f32.xlu1 %v66_v20 }
 0x17f   :  { %v71_v21 = vpop.xlane.xlu1 %70 }
 0x180   :  { %158 = vrcp.f32 %v71_v21 }
 0x186   :  { %v159_v22 = vpop.eup %158 }
 0x187   :  { %v68_v23 = vpop.xlane.xlu1 %67  ;;  %v75_v24 = vmul.f32 %v159_v22, %v155_v16 }
 0x188   :  { %160 = vrcp.f32 %v68_v23 }
 0x189   :  { %147 = vmatmul.msk.f32.vlgmr.msra.gmra.mxu2 %vm53_vm1, %v75_v24 }
 0x18e   :  { %v161_v25 = vpop.eup %160 }
 0x18f   :  { %v74_v26 = vmul.f32 %v161_v25, %v157_v19 }
 0x191   :  { %146 = vmatmul.msk.f32.vlgmr.msra.gmra.mxu1 %vm53_vm1, %v74_v26 }
 0x20c   :  { %v119_v27 = vpop.f32.mrf.mxu2 }
 0x20d   :  { %v123_v28 = vmax.f32 %v119_v27, 0.0 }
 0x20e   :  { %v96_v29 = vpop.f32.mrf.mxu1 }
 0x20f   :  { %125 = vst.msk [vmem:[#allocation2 + $0x8] sm:$0xff] %vm23_vm0, %v123_v28  ;;  %v122_v30 = vmax.f32 %v96_v29, 0.0 }
 0x211   :  { %124 = vst.msk [vmem:[#allocation2] sm:$0xff] %vm23_vm0, %v122_v30 }
 0x212   :  { %138 = dma.vmem_to_hbm [thread:$0]  %s131_s2, 256, %s133_s23, [#allocation3], %s189_s24, %s189_s24, %s190_s25  }
 0x213   :  { %186 = dma.done.wait [#allocation3], 256  }
 0x214   :  { %187 = vsyncadd [#allocation3], 4294967040 }
 0x215   :  { %143 = vsyncpa [#allocation3], 1 }

</bundles_post_ra>
